<compile_context>
chip_gen: v7x
topology: tpu7x:2x2x1
jax: 0.10.0
libtpu: 0.0.40
codegen_flags: <defaults>
</compile_context>

<pallas_src>
import functools

import jax
import jax.numpy as jnp
from jax.experimental import pallas as pl
from jax.experimental.pallas import tpu as pltpu


_SUBLANE_MULT = 32                      # covers f32(8) / bf16(16) / int8-fp8(32) packing
_TARGET_TILE_BYTES = 6 * 1024 * 1024    # ~6 MiB/block -> 24 MiB VMEM with 2 arrays x 2 buffers
_VMEM_LIMIT_BYTES = 40 * 1024 * 1024    # explicit scoped-VMEM limit (safe on v5e/v6e/v7x)


def _beta_relu_kernel(x_ref, o_ref, *, beta):
    x = x_ref[...]
    o_ref[...] = jnp.where(x >= 1.0, x, jnp.asarray(beta, dtype=x.dtype))


def _pick_leading_tile(total, bytes_per_unit, min_mult):
    """Tile size along the leading (blocked) axis.

    * Targets ~_TARGET_TILE_BYTES per block (amortizes ~0.35 us per-grid-step cost).
    * Rounds to `min_mult` (sublane packing) unless the block covers the full axis.
    * Caps at ~half the axis so the grid has >= 2 steps and both v7x TensorCores
      get work under dimension_semantics=("parallel",).
    """
    t = max(1, _TARGET_TILE_BYTES // max(1, bytes_per_unit))
    t = max(min_mult, (t // min_mult) * min_mult)
    if total >= 2 * min_mult:
        half = max(min_mult, ((total // 2) // min_mult) * min_mult)
        t = min(t, half)
    else:
        t = min(t, total)  # single full-extent block (alignment rule waived)
    return t


def _run(kernel, x_nd, block_shape, index_map, grid_len, donate):
    return pl.pallas_call(
        kernel,
        out_shape=jax.ShapeDtypeStruct(x_nd.shape, x_nd.dtype),
        grid=(grid_len,),
        in_specs=[pl.BlockSpec(block_shape, index_map)],
        out_specs=pl.BlockSpec(block_shape, index_map),
        compiler_params=pltpu.CompilerParams(
            dimension_semantics=("parallel",),
            vmem_limit_bytes=_VMEM_LIMIT_BYTES,
        ),
        input_output_aliases=({0: 0} if donate else {}),
    )(x_nd)


def my_relu(x: jax.Array, beta: float, *, donate: bool = False) -> jax.Array:
    """Applies out = where(x >= 1.0, x, beta) elementwise via a Pallas TPU kernel."""
    orig_shape = x.shape
    # BetaReLU semantics are floating-point; promote integer/bool inputs like torch would.
    if not jnp.issubdtype(x.dtype, jnp.floating):
        x = x.astype(jnp.float32)
    dtype = x.dtype
    n = x.size
    if n == 0:
        return x.reshape(orig_shape)
    itemsize = jnp.dtype(dtype).itemsize

    kernel = functools.partial(_beta_relu_kernel, beta=beta)

    # --- Path A: size divides a lane multiple -> free reshape to a lane-dense slab. ---
    lanes = next((l for l in (512, 256, 128) if n % l == 0), None)
    if lanes is not None:
        rows = n // lanes
        tile_rows = _pick_leading_tile(rows, lanes * itemsize, _SUBLANE_MULT)
        x2d = x.reshape(rows, lanes)
        out = _run(kernel, x2d, (tile_rows, lanes), lambda i: (i, 0),
                   pl.cdiv(rows, tile_rows), donate)
        return out.reshape(orig_shape)

    # --- Path B: misaligned total size.  Keep the natural trailing two dims (full-extent
    # blocks have no (8,128) requirement) and block over the collapsed leading dims.
    # No pad, no slice -> no extra HBM passes; lane density follows the input's last dim. ---
    if x.ndim >= 2:
        s, l = orig_shape[-2], orig_shape[-1]
        b = n // (s * l)
    else:
        s, l, b = 1, n, 1
    row_bytes = s * l * itemsize
    if row_bytes <= _VMEM_LIMIT_BYTES // 8:
        x3d = x.reshape(b, s, l)
        tile_b = _pick_leading_tile(b, row_bytes, 1)
        out = _run(kernel, x3d, (tile_b, s, l), lambda i: (i, 0, 0),
                   pl.cdiv(b, tile_b), donate)
        return out.reshape(orig_shape)

    # --- Path C (rare): trailing dims are both huge and not 128-aligned.  Pad to a lane
    # multiple and slice back; costs two extra HBM passes but only for pathological shapes. ---
    lanes = 512
    rows = pl.cdiv(n, lanes)
    tile_rows = _pick_leading_tile(rows, lanes * itemsize, _SUBLANE_MULT)
    x_flat = jnp.pad(x.reshape(-1), (0, rows * lanes - n))
    out = _run(kernel, x_flat.reshape(rows, lanes), (tile_rows, lanes), lambda i: (i, 0),
               pl.cdiv(rows, tile_rows), donate)
    return out.reshape(-1)[:n].reshape(orig_shape)


if __name__ == "__main__":
    beta = 0.1
    key = jax.random.PRNGKey(0)
    k0, k1, k2 = jax.random.split(key, 3)

    def ref_fn(x):
        return jnp.where(x >= 1.0, x, jnp.asarray(beta, x.dtype))

    # NCHW activation consistent with the original module (lane-aligned path A).
    x0 = jax.random.normal(k0, (2, 4, 16, 16), dtype=jnp.float32) * 2.0
    out0 = jax.block_until_ready(my_relu(x0, beta))
    assert out0.shape == x0.shape and out0.dtype == x0.dtype
    assert jnp.allclose(out0, ref_fn(x0)), "mismatch vs reference (aligned)"

    # Odd-sized tensor: size not a multiple of 128 -> natural-shape path B (no pad/slice).
    x1 = jax.random.normal(k1, (3, 5, 7, 11), dtype=jnp.float32) * 2.0
    out1 = jax.block_until_ready(my_relu(x1, beta))
    assert out1.shape == x1.shape and jnp.allclose(out1, ref_fn(x1)), "mismatch (misaligned)"

    # Size divisible by 512 but rows not a tile multiple -> exercises ragged last row-block
    # and a multi-step parallel grid.
    x2 = jax.random.normal(k2, (8, 96, 130), dtype=jnp.float32) * 2.0
    out2 = jax.block_until_ready(my_relu(x2, beta))
    assert out2.shape == x2.shape and jnp.allclose(out2, ref_fn(x2)), "mismatch (ragged rows)"

    print("KERNEL_OK")
</pallas_src>

<mosaic_0001>
module attributes {stable_mosaic.version = 11 : i64} {
  func.func @_beta_relu_kernel(%arg0: i32, %arg1: memref<4x512xf32, #tpu.memory_space<vmem>>, %arg2: memref<4x512xf32, #tpu.memory_space<vmem>>) attributes {dimension_semantics = [#tpu.dimension_semantics<parallel>], iteration_bounds = array<i64: 1>, scalar_prefetch = 0 : i64, scratch_operands = 0 : i64, tpu.core_type = #tpu.core_type<tc>, window_params = [{transform_indices = @transform_0, window_bounds = array<i64: 4, 512>}, {transform_indices = @transform_1, window_bounds = array<i64: 4, 512>}]} {
    %c0 = arith.constant 0 : index
    %c0_0 = arith.constant 0 : index
    %0 = vector.load %arg1[%c0, %c0_0] : memref<4x512xf32, #tpu.memory_space<vmem>>, vector<4x512xf32>
    %cst = arith.constant 1.000000e+00 : f32
    %1 = vector.broadcast %cst : f32 to vector<4x512xf32>
    %2 = arith.cmpf oge, %0, %1 : vector<4x512xf32>
    %cst_1 = arith.constant 1.000000e-01 : f32
    %3 = vector.broadcast %cst_1 : f32 to vector<4x512xf32>
    %4 = arith.select %2, %0, %3 : vector<4x512xi1>, vector<4x512xf32>
    %c0_2 = arith.constant 0 : index
    %c0_3 = arith.constant 0 : index
    %5 = vector.load %arg2[%c0_2, %c0_3] : memref<4x512xf32, #tpu.memory_space<vmem>>, vector<4x512xf32>
    tpu.vector_store %arg2[%c0_2, %c0_3], %4 {strides = array<i32>} : memref<4x512xf32, #tpu.memory_space<vmem>>, vector<4x512xf32>,
    return
  }
  func.func @transform_0(%arg0: i32) -> (i32, i32) {
    %c0_i32 = arith.constant 0 : i32
    %c0_i32_0 = arith.constant 0 : i32
    return %arg0, %c0_i32 : i32, i32
  }
  func.func @transform_1(%arg0: i32) -> (i32, i32) {
    %c0_i32 = arith.constant 0 : i32
    %c0_i32_0 = arith.constant 0 : i32
    return %arg0, %c0_i32 : i32, i32
  }
}

</mosaic_0001>

<bundles_post_ra>
// kernel: tpu_custom_call.1
= control target key start
LH: loop header
LB: loop body
LE: loop exit
PB: predicated region body
PF: predicated region fallthrough
CT: control target
= control target key end

     0   :  { %6 = vsyncpa [#allocation3], 0  ;;  %s130_s0 = inlined_call_operand.hbm [shape: f32[4,512], index: 0, kind: input, shape index: {}]   ;;  %s131_s1 = inlined_call_operand.hbm [shape: f32[4,512], index: 1, kind: output, shape index: {}]  }
   0x1   :  { %7 = vsyncpa [#allocation4], 0  ;;  %s94_s6 = smov [#allocation2]   ;;  %s46_s10 = scalar_lea.hbm %s130_s0, 256 }
   0x2   :  { %s14_s7 = sshll.u32 %s94_s6, 4  ;;  %p47_p0 = scmp.ne.s32.totalorder %s130_s0, %s46_s10  ;;  %s15_s7 = int_to_ptr.vmem [resolvable:$true] %s14_s7 }
   0x3   :  { %p50_p1 = scmp.lt.u32.totalorder %s46_s10, %s130_s0 }
   0x5   :  { %p52_p2 = pnand %p50_p1, %p47_p0 }
   0x7   :  { %55 = shalt.err (!%p52_p2)
}
   0x8   :  { %s56_s15 = scalar_lea.vmem %s15_s7, 256  ;;  %p61_p4 = scmp.lt.s32.totalorder %s15_s7, %s15_s7 }
   0x9   :  { %p57_p3 = scmp.ne.s32.totalorder %s15_s7, %s56_s15  ;;  %p62_p5 = scmp.lt.s32.totalorder %s56_s15, %s56_s15 }
   0xb   :  { %p63_p6 = por %p62_p5, %p61_p4 }
   0xd   :  { %p64_p7 = pnand %p63_p6, %p57_p3 }
   0xf   :  { %67 = shalt.err (!%p64_p7)
}
  0x10   :  { %17 = dma.hbm_to_vmem [thread:$0]  %s130_s0, 256, %s15_s7, [#allocation3]  }
  0x11   :  { %90 = dma.done.wait [#allocation3], 256  }
  0x12   :  { %91 = vsyncadd [#allocation3], 4294967040  ;;  %s95_s18 = smov [#allocation5]   ;;  %v21_v0 = vld [vmem:[#allocation2] sm:$0xff]  ;;  %v22_v1 = vld [vmem:[#allocation2 + $0x8] sm:$0xff] }
  0x13   :  { %s35_s19 = sshll.u32 %s95_s18, 4  ;;  %vm23_vm0 = vcmp.ge.f32.partialorder %v21_v0, 1.0  ;;  %vm24_vm1 = vcmp.ge.f32.partialorder %v22_v1, 1.0  ;;  %s36_s19 = int_to_ptr.vmem [resolvable:$true] %s35_s19 }
  0x14   :  { %v25_v2 = vsel %vm23_vm0, %v21_v0, 0.1  ;;  %v26_v3 = vsel %vm24_vm1, %v22_v1, 0.1  ;;  %s68_s20 = scalar_lea.vmem %s36_s19, 256  ;;  %p73_p9 = scmp.lt.s32.totalorder %s36_s19, %s36_s19 }
  0x15   :  { %27 = vst [vmem:[#allocation5] sm:$0xff] %v25_v2  ;;  %28 = vst [vmem:[#allocation5 + $0x8] sm:$0xff] %v26_v3  ;;  %p69_p8 = scmp.ne.s32.totalorder %s36_s19, %s68_s20  ;;  %p74_p10 = scmp.lt.s32.totalorder %s68_s20, %s68_s20 }
  0x17   :  { %p75_p11 = por %p74_p10, %p73_p9 }
  0x19   :  { %p76_p12 = pnand %p75_p11, %p69_p8 }
  0x1b   :  { %79 = shalt.err (!%p76_p12)
}
  0x1c   :  { %s80_s22 = scalar_lea.hbm %s131_s1, 256 }
  0x1d   :  { %p81_p13 = scmp.ne.s32.totalorder %s131_s1, %s80_s22  ;;  %p84_p0 = scmp.lt.u32.totalorder %s80_s22, %s131_s1 }
  0x1f   :  { %p86_p1 = pnand %p84_p0, %p81_p13 }
  0x21   :  { %89 = shalt.err (!%p86_p1)
}
  0x22   :  { %38 = dma.vmem_to_hbm [thread:$0]  %s36_s19, 256, %s131_s1, [#allocation4]  }
  0x23   :  { %92 = dma.done.wait [#allocation4], 256  }
  0x24   :  { %93 = vsyncadd [#allocation4], 4294967040 }
  0x25   :  { %42 = vsyncpa [#allocation3], 1 }
  0x26   :  { %43 = vsyncpa [#allocation4], 1 }

</bundles_post_ra>
